<compile_context>
chip_gen: v6e
topology: v6e:2x2x1
jax: 0.10.0
libtpu: 0.0.40
codegen_flags: <defaults>
</compile_context>

<pallas_src>
import functools

import jax
import jax.numpy as jnp
from jax import lax
from jax.experimental import pallas as pl
from jax.experimental.pallas import tpu as pltpu


_VMEM_LIMIT = 32 * 1024 * 1024        # safe scoped-VMEM ceiling on v5e/v6e/v7x
_TILE_BUDGET = 8 * 1024 * 1024        # per double-buffered input block
_MAX_TILE = 512                       # batch rows per grid step (review: 128-512)
_FAST_TABLE_BYTES = 2 * 1024 * 1024   # emb resident-in-VMEM threshold
_FAST_MAX_CLASSES = 4096              # keep the one-hot matmul cheap


def _round_up(x, m):
    return (x + m - 1) // m * m


def _pick_tile(batch, minor, itemsize):
    """Batch rows per grid step: multiple of 8, <= _MAX_TILE, and the
    double-buffered (rows x minor) block stays within _TILE_BUDGET (keeps the
    tile legal on v7x's smaller 64 MiB VMEM as well as v5e/v6e)."""
    cap = _TILE_BUDGET // max(2 * minor * itemsize, 1)
    cap = max(8, (cap // 8) * 8)
    t = min(_MAX_TILE, _round_up(batch, 8), cap)
    return max(8, (t // 8) * 8)


def _row_argmax(y, num_classes):
    """First-occurrence argmax along lanes, clamped into [0, C-1].

    Clamping keeps the row index in range even for NaN rows (max propagates
    NaN so no lane compares equal) and for garbage rows of a partial batch
    block, so the downstream gather can never read out of bounds.
    """
    rows, cols = y.shape
    col = lax.broadcasted_iota(jnp.int32, (rows, cols), 1)
    row_max = jnp.max(y, axis=1, keepdims=True)              # XLU lane reduce
    idx = jnp.min(jnp.where(y == row_max, col, num_classes), axis=1,
                  keepdims=True)
    return jnp.minimum(idx, num_classes - 1)                 # (rows, 1) int32


# --------------------- fast path: fused argmax + gather ---------------------

def _fused_small_kernel(y_ref, emb_ref, o_ref):
    # y_ref: (T, C); emb_ref: (C, D) VMEM-resident across tiles; o_ref: (T, D)
    y = y_ref[...]
    rows, cols = y.shape
    idx = _row_argmax(y, cols)                                # (T, 1)
    col = lax.broadcasted_iota(jnp.int32, (rows, cols), 1)
    onehot = (col == idx).astype(emb_ref.dtype)               # (T, C)
    o_ref[...] = jnp.dot(onehot, emb_ref[...],
                         preferred_element_type=jnp.float32).astype(o_ref.dtype)


# ------------------- large path kernel 1: per-row argmax --------------------

def _argmax_kernel(y_ref, idx_ref):
    y = y_ref[...]
    idx_ref[...] = _row_argmax(y, y.shape[1])


# ------------------ large path kernel 2: HBM row-DMA gather -----------------

def _make_gather_kernel(batch, tile):
    def kernel(idx_ref, emb_hbm, o_ref, sem_ref):
        # idx_ref : SMEM (>=batch,) int32  (scalar prefetch)
        # emb_hbm : HBM  (C, D)            (memory_space=pl.ANY, never staged)
        # o_ref   : VMEM (tile, D)         output block: rows DMA'd directly in
        # sem_ref : (1,) DMA semaphore     shared counting semaphore
        sem = sem_ref.at[0]
        base = pl.program_id(0) * tile
        nvalid = jnp.minimum(tile, batch - base)   # skip padded batch rows

        def _start(r, carry):
            row = idx_ref[base + r]                # already clamped in-range
            pltpu.make_async_copy(emb_hbm.at[row], o_ref.at[r], sem).start()
            return carry

        lax.fori_loop(0, nvalid, _start, 0)

        # All row copies are identical-sized and share one counting semaphore,
        # so `nvalid` waits (the descriptor only supplies shape + semaphore)
        # drain exactly the `nvalid` issued copies; the last wait can only
        # return once every gathered row has landed in o_ref, i.e. before the
        # pipeline writes the block back to HBM.
        def _drain(r, carry):
            pltpu.make_async_copy(emb_hbm.at[0], o_ref.at[r], sem).wait()
            return carry

        lax.fori_loop(0, nvalid, _drain, 0)

    return kernel


# -------------------------------- wrapper ----------------------------------

@functools.partial(jax.jit, static_argnames=("force_large_table",))
def class2param_forward(y, emb, force_large_table=False):
    """y: (B, C) float scores/one-hots, emb: (C, D) -> (B, D) = emb[argmax(y,1)]."""
    B, C = y.shape
    C2, D = emb.shape
    assert C == C2

    table_bytes = C * D * emb.dtype.itemsize
    use_fast = (not force_large_table and table_bytes <= _FAST_TABLE_BYTES
                and C <= _FAST_MAX_CLASSES)

    if use_fast:
        # Single fused kernel; emb stays resident in VMEM across batch tiles.
        t = _pick_tile(B, C + D, max(y.dtype.itemsize, emb.dtype.itemsize))
        n_tiles = pl.cdiv(B, t)
        out_pad = pl.pallas_call(
            _fused_small_kernel,
            out_shape=jax.ShapeDtypeStruct((n_tiles * t, D), emb.dtype),
            grid=(n_tiles,),
            in_specs=[pl.BlockSpec((t, C), lambda i: (i, 0)),
                      pl.BlockSpec((C, D), lambda i: (0, 0))],  # VMEM-resident
            out_specs=pl.BlockSpec((t, D), lambda i: (i, 0)),
            compiler_params=pltpu.CompilerParams(
                dimension_semantics=("parallel",),
                vmem_limit_bytes=_VMEM_LIMIT),
        )(y, emb)
        return out_pad[:B]

    # ------------------------- large-table path ----------------------------
    # 1) per-row argmax on large batch tiles; y is blocked with the full class
    #    axis (no host-side lane padding pass over y).  The (t_arg, 1) idx
    #    store is lane-sparse but negligible: 4 B/row written vs 4*C B/row read.
    #    Note: for num_classes >~ 100K, add a class grid axis with a running
    #    max/argmax accumulator to stay within v7x's 64 MiB VMEM.
    t_arg = _pick_tile(B, C, y.dtype.itemsize)
    n_arg = pl.cdiv(B, t_arg)
    idx2d = pl.pallas_call(
        _argmax_kernel,
        out_shape=jax.ShapeDtypeStruct((n_arg * t_arg, 1), jnp.int32),
        grid=(n_arg,),
        in_specs=[pl.BlockSpec((t_arg, C), lambda i: (i, 0))],
        out_specs=pl.BlockSpec((t_arg, 1), lambda i: (i, 0)),
        compiler_params=pltpu.CompilerParams(
            dimension_semantics=("parallel",),
            vmem_limit_bytes=_VMEM_LIMIT),
    )(y)
    idx = idx2d.reshape(-1)

    # 2) DMA row gather: emb stays in HBM (un-padded), indices are prefetched
    #    into SMEM, and each selected row is DMA'd directly into the output
    #    block -- no VMEM staging buffer and no vector copy.
    t_g = _pick_tile(B, D, emb.dtype.itemsize)
    n_g = pl.cdiv(B, t_g)
    out_pad = pl.pallas_call(
        _make_gather_kernel(B, t_g),
        out_shape=jax.ShapeDtypeStruct((n_g * t_g, D), emb.dtype),
        grid_spec=pltpu.PrefetchScalarGridSpec(
            num_scalar_prefetch=1,
            grid=(n_g,),
            in_specs=[pl.BlockSpec(memory_space=pl.ANY)],
            out_specs=pl.BlockSpec((t_g, D), lambda i, idx_ref: (i, 0)),
            scratch_shapes=[pltpu.SemaphoreType.DMA((1,))]),
        compiler_params=pltpu.CompilerParams(
            dimension_semantics=("parallel",),
            vmem_limit_bytes=_VMEM_LIMIT),
    )(idx, emb)
    return out_pad[:B]


def make_emb(num_classes, output_dim, dtype=jnp.float32):
    # Matches the module __init__: zeros with the last column set to 5.
    emb = jnp.zeros((num_classes, output_dim), dtype=dtype)
    return emb.at[:, -1].add(5.0)


if __name__ == "__main__":
    key = jax.random.PRNGKey(0)
    k1, k2, k3 = jax.random.split(key, 3)

    # 1) Module-default small shapes -> fused VMEM-resident fast path.
    num_classes, output_dim, batch = 4, 32, 2
    y = jax.random.normal(k1, (batch, num_classes), dtype=jnp.float32)
    emb = make_emb(num_classes, output_dim)
    out = jax.block_until_ready(class2param_forward(y, emb))
    ref = emb[jnp.argmax(y, axis=1), :]
    assert out.shape == (batch, output_dim)
    assert jnp.allclose(out, ref), "fast path mismatch vs reference"

    # 2) Same op forced through the large-table HBM row-gather path, with
    #    deliberately unaligned shapes (partial batch tile, odd C and D).
    B2, C2, D2 = 13, 37, 48
    y2 = jax.random.normal(k2, (B2, C2), dtype=jnp.float32)
    emb2 = jax.random.normal(k3, (C2, D2), dtype=jnp.float32)
    out2 = jax.block_until_ready(
        class2param_forward(y2, emb2, force_large_table=True))
    ref2 = emb2[jnp.argmax(y2, axis=1), :]
    assert out2.shape == (B2, D2)
    assert jnp.allclose(out2, ref2), "gather path mismatch vs reference"

    print("KERNEL_OK")
</pallas_src>

<mosaic_0001>
module attributes {stable_mosaic.version = 11 : i64} {
  func.func @_fused_small_kernel(%arg0: i32, %arg1: memref<8x4xf32, #tpu.memory_space<vmem>>, %arg2: memref<4x32xf32, #tpu.memory_space<vmem>>, %arg3: memref<8x32xf32, #tpu.memory_space<vmem>>) attributes {dimension_semantics = [#tpu.dimension_semantics<parallel>], iteration_bounds = array<i64: 1>, scalar_prefetch = 0 : i64, scratch_operands = 0 : i64, tpu.core_type = #tpu.core_type<tc>, window_params = [{transform_indices = @transform_0, window_bounds = array<i64: 8, 4>}, {pipeline_mode = #tpu.pipeline_mode<synchronous>, transform_indices = @transform_1, window_bounds = array<i64: 4, 32>}, {transform_indices = @transform_2, window_bounds = array<i64: 8, 32>}]} {
    %c0 = arith.constant 0 : index
    %c0_0 = arith.constant 0 : index
    %0 = vector.load %arg1[%c0, %c0_0] : memref<8x4xf32, #tpu.memory_space<vmem>>, vector<8x4xf32>
    %1 = tpu.iota {dimensions = array<i32: 1>} : vector<8x4xi32>
    %cst = arith.constant dense<0xFF800000> : vector<8xf32>
    %2 = vector.multi_reduction <maximumf>, %0, %cst [1] : vector<8x4xf32> to vector<8xf32>
    %3 = vector.shape_cast %2 : vector<8xf32> to vector<8x1xf32>
    %4 = vector.broadcast %3 : vector<8x1xf32> to vector<8x4xf32>
    %5 = arith.cmpf oeq, %0, %4 : vector<8x4xf32>
    %c4_i32 = arith.constant 4 : i32
    %6 = vector.broadcast %c4_i32 : i32 to vector<8x4xi32>
    %7 = arith.select %5, %1, %6 : vector<8x4xi1>, vector<8x4xi32>
    %cst_1 = arith.constant dense<2147483647> : vector<8xi32>
    %8 = vector.multi_reduction <minsi>, %7, %cst_1 [1] : vector<8x4xi32> to vector<8xi32>
    %9 = vector.shape_cast %8 : vector<8xi32> to vector<8x1xi32>
    %c3_i32 = arith.constant 3 : i32
    %10 = vector.broadcast %c3_i32 : i32 to vector<8x1xi32>
    %11 = arith.minsi %9, %10 : vector<8x1xi32>
    %12 = tpu.iota {dimensions = array<i32: 1>} : vector<8x4xi32>
    %13 = vector.broadcast %11 : vector<8x1xi32> to vector<8x4xi32>
    %14 = arith.cmpi eq, %12, %13 : vector<8x4xi32>
    %15 = arith.extui %14 : vector<8x4xi1> to vector<8x4xi32>
    %16 = arith.sitofp %15 : vector<8x4xi32> to vector<8x4xf32>
    %c0_2 = arith.constant 0 : index
    %c0_3 = arith.constant 0 : index
    %17 = vector.load %arg2[%c0_2, %c0_3] : memref<4x32xf32, #tpu.memory_space<vmem>>, vector<4x32xf32>
    %cst_4 = arith.constant dense<0.000000e+00> : vector<8x32xf32>
    %18 = tpu.matmul %16, %17, %cst_4 {dimension_numbers = #tpu.dot_dimension_numbers<[1], [0], [0], [1], [0, 0, 1, 1], [], []>} : vector<8x4xf32>, vector<4x32xf32>, vector<8x32xf32> -> vector<8x32xf32>
    %c0_5 = arith.constant 0 : index
    %c0_6 = arith.constant 0 : index
    %19 = vector.load %arg3[%c0_5, %c0_6] : memref<8x32xf32, #tpu.memory_space<vmem>>, vector<8x32xf32>
    tpu.vector_store %arg3[%c0_5, %c0_6], %18 {strides = array<i32>} : memref<8x32xf32, #tpu.memory_space<vmem>>, vector<8x32xf32>,
    return
  }
  func.func @transform_0(%arg0: i32) -> (i32, i32) {
    %c0_i32 = arith.constant 0 : i32
    %c0_i32_0 = arith.constant 0 : i32
    return %arg0, %c0_i32 : i32, i32
  }
  func.func @transform_1(%arg0: i32) -> (i32, i32) {
    %c0_i32 = arith.constant 0 : i32
    %c0_i32_0 = arith.constant 0 : i32
    %c0_i32_1 = arith.constant 0 : i32
    return %c0_i32, %c0_i32_0 : i32, i32
  }
  func.func @transform_2(%arg0: i32) -> (i32, i32) {
    %c0_i32 = arith.constant 0 : i32
    %c0_i32_0 = arith.constant 0 : i32
    return %arg0, %c0_i32 : i32, i32
  }
}

</mosaic_0001>

<bundles_post_ra>
// kernel: class2param_forward.1
= control target key start
LH: loop header
LB: loop body
LE: loop exit
PB: predicated region body
PF: predicated region fallthrough
CT: control target
= control target key end

     0   :  { %7 = vsyncpa [#allocation3], 0  ;;  %s245_s0 = inlined_call_operand.hbm [shape: f32[2,4], index: 0, kind: input, shape index: {}]   ;;  %s246_s1 = inlined_call_operand.hbm [shape: f32[4,32], index: 1, kind: input, shape index: {}]   ;;  %s247_s2 = inlined_call_operand.vmem [shape: f32[8,32], index: 2, kind: output, shape index: {}]  }
   0x1   :  { %8 = vsyncpa [#allocation5], 0 }
   0x2   :  { %13 = vsyncadd [#allocation3], 96  ;;  %s212_s9 = smov [#allocation2]  }
   0x3   :  { %s14_s10 = sshll.u32 %s212_s9, 4  ;;  %s15_s10 = int_to_ptr.vmem [resolvable:$true] %s14_s10 }
   0x4   :  { %s176_s11 = scalar_lea.vmem %s15_s10, 32  ;;  %s180_s12 = scalar_lea.vmem %s15_s10, 128 }
   0x5   :  { %p177_p0 = scmp.ne.s32.totalorder %s15_s10, %s176_s11  ;;  %p181_p1 = scmp.lt.s32.totalorder %s15_s10, %s15_s10 }
   0x6   :  { %p182_p2 = scmp.lt.s32.totalorder %s180_s12, %s176_s11 }
   0x8   :  { %p183_p3 = por %p182_p2, %p181_p1 }
   0xa   :  { %p184_p4 = pnand %p183_p3, %p177_p0 }
   0xc   :  { %187 = shalt.err (!%p184_p4)
}
   0xd   :  { %s213_s13 = smov 32   ;;  %s214_s14 = smov 2  }
   0xe   :  { %20 = dma.hbm_to_vmem [thread:$0]  %s245_s0, 32, %s15_s10, [#allocation3], %s213_s13, %s213_s13, %s214_s14  }
   0xf   :  { %s215_s17 = smov [#allocation4]  }
  0x10   :  { %s27_s18 = sshll.u32 %s215_s17, 4  ;;  %s28_s18 = int_to_ptr.vmem [resolvable:$true] %s27_s18 }
  0x11   :  { %s196_s19 = scalar_lea.vmem %s28_s18, 64  ;;  %p201_p6 = scmp.lt.s32.totalorder %s28_s18, %s28_s18 }
  0x12   :  { %p197_p5 = scmp.ne.s32.totalorder %s28_s18, %s196_s19  ;;  %p202_p7 = scmp.lt.s32.totalorder %s196_s19, %s196_s19 }
  0x14   :  { %p203_p8 = por %p202_p7, %p201_p6 }
  0x16   :  { %p204_p9 = pnand %p203_p8, %p197_p5 }
  0x18   :  { %207 = shalt.err (!%p204_p9)
}
  0x19   :  { %30 = dma.hbm_to_vmem [thread:$0]  %s246_s1, 64, %s28_s18, [#allocation5]  }
  0x1a   :  { %208 = dma.done.wait [#allocation3], 128  }
  0x1b   :  { %209 = vsyncadd [#allocation3], 4294967168 }
  0x1c   :  { %210 = dma.done.wait [#allocation5], 64  }
  0x1d   :  { %211 = vsyncadd [#allocation5], 4294967232  ;;  %vm40_vm0 = vcmask 31744   ;;  %v37_v0 = vld [vmem:[#allocation2] sm:$0xff]  ;;  %v38_v2 = vlaneseq  ;;  %v66_v13 = vld [vmem:[#allocation4] sm:$0xf] }
  0x1e   :  { %v41_v1 = vsel %vm40_vm0, %v37_v0, -inf  ;;  %vm70_vm3 = vcmask 1043456   ;;  %v216_v14 = vmov 0.0   ;;  %vm217_vm4 = vmmov 0  }
  0x1f   :  { %42 = vmax.xlane.f32.xlu0 %v41_v1  ;;  %v39_v3 = vand.u32 127, %v38_v2  ;;  %157 = vmatprep.subr.mxu0 %v216_v14  ;;  %vm144_vm7 = vcmask 261120  }
  0x20   :  { %159 = vmatprep.mubr.msk.f32.mxu0 %vm217_vm4, %v216_v14  ;;  %158 = vmatpush3.msk.msra.mxu0 %vm70_vm3, %v66_v13 }
  0xa8   :  { %v43_v4 = vpop.xlane.xlu0 %42 }
  0xa9   :  { %vm44_vm1 = vcmp.eq.f32.partialorder %v37_v0, %v43_v4 }
  0xaa   :  { %v45_v5 = vsel %vm44_vm1, %v39_v3, 4 }
  0xab   :  { %v46_v6 = vsel %vm40_vm0, %v45_v5, 2147483647 }
  0xac   :  { %v48_v7 = vshra.s32 %v46_v6, 16  ;;  %v47_v9 = vand.u32 65535, %v46_v6 }
  0xae   :  { %v50_v8 = vcvt.s32.f32 %v48_v7  ;;  %v49_v11 = vcvt.s32.f32 %v47_v9 }
  0xb0   :  { %51 = vmin.xlane.f32.xlu0 %v50_v8 }
 0x139   :  { %v52_v10 = vpop.xlane.xlu0 %51 }
 0x13a   :  { %vm53_vm2 = vcmp.eq.f32.partialorder %v50_v8, %v52_v10  ;;  %v58_v15 = vcvt.f32.s32 %v52_v10 }
 0x13b   :  { %v54_v12 = vsel %vm53_vm2, %v49_v11, inf }
 0x13c   :  { %55 = vmin.xlane.f32.xlu1 %v54_v12  ;;  %v59_v17 = vshll.u32 %v58_v15, 16 }
 0x1c5   :  { %v56_v16 = vpop.xlane.xlu1 %55 }
 0x1c6   :  { %v57_v18 = vcvt.f32.s32 %v56_v16 }
 0x1c8   :  { %v60_v19 = vadd.s32 %v59_v17, %v57_v18 }
 0x1ca   :  { %vm61_vm5 = vcmp.lt.s32.totalorder %v60_v19, 3 }
 0x1cb   :  { %v62_v20 = vsel %vm61_vm5, %v60_v19, 3 }
 0x1cc   :  { %vm63_vm6 = vcmp.eq.s32.totalorder %v39_v3, %v62_v20 }
 0x1cd   :  { %v152_v21 = vsel %vm63_vm6, 1.0, %v216_v14 }
 0x1ce   :  { %160 = vmatmul.mubr.msk.f32.vlgmr.msra.gmra.mxu0 %vm40_vm0, %v152_v21 }
 0x28e   :  { %v140_v22 = vpop.f32.mrf.mxu0 }
 0x28f   :  { %145 = vst.msk [vmem:[%s247_s2] sm:$0xff] %vm144_vm7, %v140_v22 }
 0x290   :  { %v161_v23 = vpop.f32.mrf.mxu0 }
 0x291   :  { %150 = vsyncpa [#allocation3], 1 }
 0x292   :  { %151 = vsyncpa [#allocation5], 1 }

</bundles_post_ra>
